<compile_context>
chip_gen: v7x
topology: tpu7x:2x2x1
jax: 0.10.0
libtpu: 0.0.40
codegen_flags: <defaults>
</compile_context>

<pallas_src>
import functools

import jax
import jax.numpy as jnp
from jax.experimental import pallas as pl
from jax.experimental.pallas import tpu as pltpu


_DK = 256                     # K tile when w1 is streamed (MXU-native on v6e/v7x)
_RESIDENT_W1_BYTES = 8 << 20  # keep w1 fully VMEM-resident up to this many bytes
_VMEM_BUDGET = 40 << 20       # soft VMEM budget used to size the batch tile


def _round_up(x, m):
    return ((x + m - 1) // m) * m


def _padded_vmem_bytes(rows, cols, itemsize):
    # VMEM tiles are (8, 128) x 32-bit (16-bit dtypes pack 2x on sublanes); account
    # for lane/sublane padding so footprint / vmem_limit estimates are not low.
    sub = 16 if itemsize < 4 else 8
    return _round_up(max(int(rows), 1), sub) * _round_up(max(int(cols), 1), 128) * itemsize


def _k_tiling(d, h, w_itemsize):
    """(d_pad, dk, num_k) for the first matmul's contraction dimension."""
    if d * h * w_itemsize <= _RESIDENT_W1_BYTES:
        return d, d, 1
    d_pad = _round_up(d, _DK)
    return d_pad, _DK, d_pad // _DK


def prepare_params(w1, b1, w2, b2, weight_dtype=None):
    """One-time parameter preprocessing (call at load time, NOT per forward).

    Input (PyTorch nn.Linear layout): w1 [H, D], b1 [H], w2 [O, H], b2 [O].
    Output: (w1t [D_pad, H], b1 [1, H] f32, w2t [H, O], b2 [1, O] f32); D is only
    zero-padded (to a multiple of 256) when w1 is too large to keep VMEM-resident.
    weight_dtype=jnp.bfloat16 stores weights in bf16 (recommended on v6e/v7x at
    scale); the kernel still accumulates in f32.
    """
    w1 = jnp.asarray(w1)
    w2 = jnp.asarray(w2)
    H, D = w1.shape
    O = w2.shape[0]
    wdt = jnp.dtype(weight_dtype) if weight_dtype is not None else w1.dtype
    w1t = w1.astype(wdt).T                                   # [D, H]
    w2t = w2.astype(wdt).T                                   # [H, O]
    b1r = jnp.asarray(b1).astype(jnp.float32).reshape(1, H)  # [1, H] (f32 epilogue)
    b2r = jnp.asarray(b2).astype(jnp.float32).reshape(1, O)  # [1, O]
    d_pad, _, _ = _k_tiling(D, H, wdt.itemsize)
    if d_pad != D:
        w1t = jnp.pad(w1t, ((0, d_pad - D), (0, 0)))
    return w1t, b1r, w2t, b2r


def _mlp_kernel(x_ref, w1_ref, b1_ref, w2_ref, b2_ref, out_ref, h_acc, *, precision):
    # Grid = (batch tiles, K tiles of the first matmul); K axis is the reduction.
    k = pl.program_id(1)

    @pl.when(k == 0)
    def _init():
        h_acc[...] = jnp.zeros_like(h_acc)

    # First linear: accumulate partial x @ w1 in f32 on the MXU.
    x = x_ref[...].astype(w1_ref.dtype)
    h_acc[...] += jnp.dot(x, w1_ref[...],
                          preferred_element_type=jnp.float32, precision=precision)

    @pl.when(k == pl.num_programs(1) - 1)
    def _finalize():
        # Bias + ReLU epilogue in f32, second linear, single cast at the store.
        h = jnp.maximum(h_acc[...] + b1_ref[...], 0.0)
        y = jnp.dot(h.astype(w2_ref.dtype), w2_ref[...],
                    preferred_element_type=jnp.float32, precision=precision)
        out_ref[...] = (y + b2_ref[...]).astype(out_ref.dtype)


@functools.partial(jax.jit, static_argnames=("block_b", "precision"))
def mlp_forward(x, params, *, block_b=1024, precision=None):
    """x: [B, input_dim]; params from prepare_params(); returns [B, out_size]."""
    w1t, b1r, w2t, b2r = params
    B, d_in = x.shape
    d_pad, H = w1t.shape
    O = w2t.shape[1]
    x_bytes = x.dtype.itemsize
    w_bytes = w1t.dtype.itemsize

    d_exp, dk, num_k = _k_tiling(d_in, H, w_bytes)
    if d_exp != d_pad or dk * num_k != d_pad:
        raise ValueError("params do not match x: run prepare_params() on the "
                         "weights for this input_dim / weight_dtype")
    if d_pad != d_in:
        x = jnp.pad(x, ((0, 0), (0, d_pad - d_in)))  # zero cols: no matmul effect

    # Batch tile: minimise padding waste, keep >=2 grid steps when B >= 16 (both
    # TensorCores on v7x), multiple of 8 sublanes, and fit the VMEM budget.
    nb = max(pl.cdiv(B, block_b), 1)
    if B >= 16 and nb < 2:
        nb = 2
    tb = _round_up(pl.cdiv(B, nb), 8)

    def footprint(tb_):
        fp = (_padded_vmem_bytes(1, H, 4)                 # b1 (single-buffered)
              + _padded_vmem_bytes(H, O, w_bytes)         # w2 (single-buffered)
              + _padded_vmem_bytes(1, O, 4))              # b2 (single-buffered)
        w1_fp = _padded_vmem_bytes(dk, H, w_bytes)
        fp += w1_fp if num_k == 1 else 2 * w1_fp          # resident vs streamed
        fp += 2 * _padded_vmem_bytes(tb_, dk, x_bytes)    # x tile (double-buffered)
        fp += 2 * _padded_vmem_bytes(tb_, O, x_bytes)     # out tile (double-buffered)
        fp += _padded_vmem_bytes(tb_, H, 4)               # f32 h accumulator scratch
        return fp

    while footprint(tb) > _VMEM_BUDGET and tb > 8:
        tb = _round_up(pl.cdiv(tb, 2), 8)
    nb = pl.cdiv(B, tb)
    b_pad = nb * tb
    if b_pad != B:
        x = jnp.pad(x, ((0, b_pad - B), (0, 0)))

    vmem_limit = int(min(max(footprint(tb) + (8 << 20), 16 << 20), 60 << 20))
    cost = pl.CostEstimate(
        flops=2 * b_pad * d_pad * H + 2 * b_pad * H * O,
        transcendentals=0,
        bytes_accessed=int(b_pad * d_pad * x_bytes + d_pad * H * w_bytes
                           + H * 4 + H * O * w_bytes + O * 4 + b_pad * O * x_bytes),
    )

    resident = pl.Buffered(1)  # constant-index blocks: no double buffering needed
    if num_k == 1:
        w1_spec = pl.BlockSpec((dk, H), lambda i, k: (0, 0), pipeline_mode=resident)
    else:
        w1_spec = pl.BlockSpec((dk, H), lambda i, k: (k, 0))  # streamed, 2-buffered

    out = pl.pallas_call(
        functools.partial(_mlp_kernel, precision=precision),
        out_shape=jax.ShapeDtypeStruct((b_pad, O), x.dtype),
        grid=(nb, num_k),
        in_specs=[
            pl.BlockSpec((tb, dk), lambda i, k: (i, k)),                        # x
            w1_spec,                                                            # w1
            pl.BlockSpec((1, H), lambda i, k: (0, 0), pipeline_mode=resident),  # b1
            pl.BlockSpec((H, O), lambda i, k: (0, 0), pipeline_mode=resident),  # w2
            pl.BlockSpec((1, O), lambda i, k: (0, 0), pipeline_mode=resident),  # b2
        ],
        out_specs=pl.BlockSpec((tb, O), lambda i, k: (i, 0)),
        scratch_shapes=[pltpu.VMEM((tb, H), jnp.float32)],
        compiler_params=pltpu.CompilerParams(
            dimension_semantics=("parallel", "arbitrary"),
            vmem_limit_bytes=vmem_limit,
        ),
        cost_estimate=cost,
    )(x, w1t, b1r, w2t, b2r)

    return out if b_pad == B else out[:B]


if __name__ == "__main__":
    key = jax.random.PRNGKey(0)
    kx, kw1, kb1, kw2, kb2, kx2, kw1b, kw2b = jax.random.split(key, 8)

    # --- Small shapes consistent with MLP(input_dim=32, hidden=32, out_size=1) ---
    B, input_dim, hidden, out_size = 8, 32, 32, 1
    x = jax.random.normal(kx, (B, input_dim), dtype=jnp.float32)
    # PyTorch nn.Linear parameter layout: weight [out, in], bias [out].
    w1 = jax.random.normal(kw1, (hidden, input_dim), dtype=jnp.float32) * 0.1
    b1 = jax.random.normal(kb1, (hidden,), dtype=jnp.float32) * 0.1
    w2 = jax.random.normal(kw2, (out_size, hidden), dtype=jnp.float32) * 0.1
    b2 = jax.random.normal(kb2, (out_size,), dtype=jnp.float32) * 0.1
    ref = jnp.maximum(x @ w1.T + b1, 0.0) @ w2.T + b2

    # 1) f32 weights (default path, single fused grid step).
    params = prepare_params(w1, b1, w2, b2)
    out = jax.block_until_ready(mlp_forward(x, params))
    assert out.shape == (B, out_size)
    assert jnp.allclose(out, ref, atol=1e-5, rtol=1e-5)

    # 2) bf16 weight storage (v6e/v7x MXU-native); f32 accumulation in the kernel.
    params_bf16 = prepare_params(w1, b1, w2, b2, weight_dtype=jnp.bfloat16)
    out_bf16 = jax.block_until_ready(mlp_forward(x, params_bf16))
    assert out_bf16.shape == (B, out_size)
    assert jnp.allclose(out_bf16, ref, atol=3e-2, rtol=3e-2)

    # 3) Larger model + batch: exercises >=2 batch tiles (both TCs on v7x), batch
    #    padding, and the K-tiled accumulator path (w1 too big to keep resident).
    B2, D2, H2 = 600, 4096, 640
    x2 = jax.random.normal(kx2, (B2, D2), dtype=jnp.float32)
    w1b = jax.random.normal(kw1b, (H2, D2), dtype=jnp.float32) * (D2 ** -0.5)
    w2b = jax.random.normal(kw2b, (out_size, H2), dtype=jnp.float32) * (H2 ** -0.5)
    b1b = jnp.zeros((H2,), jnp.float32)
    b2b = jnp.zeros((out_size,), jnp.float32)
    ref2 = jnp.maximum(x2 @ w1b.T + b1b, 0.0) @ w2b.T + b2b
    params2 = prepare_params(w1b, b1b, w2b, b2b)
    out2 = jax.block_until_ready(mlp_forward(x2, params2))
    assert out2.shape == (B2, out_size)
    assert jnp.allclose(out2, ref2, atol=1e-2, rtol=1e-2)

    print("KERNEL_OK")
</pallas_src>

<mosaic_0001>
module attributes {stable_mosaic.version = 11 : i64} {
  func.func @_mlp_kernel(%arg0: i32, %arg1: i32, %arg2: memref<8x32xf32, #tpu.memory_space<vmem>>, %arg3: memref<32x32xf32, #tpu.memory_space<vmem>>, %arg4: memref<1x32xf32, #tpu.memory_space<vmem>>, %arg5: memref<32x1xf32, #tpu.memory_space<vmem>>, %arg6: memref<1x1xf32, #tpu.memory_space<vmem>>, %arg7: memref<8x1xf32, #tpu.memory_space<vmem>>, %arg8: memref<8x32xf32, #tpu.memory_space<vmem>>) attributes {dimension_semantics = [#tpu.dimension_semantics<parallel>, #tpu.dimension_semantics<arbitrary>], iteration_bounds = array<i64: 1, 1>, scalar_prefetch = 0 : i64, scratch_operands = 1 : i64, tpu.core_type = #tpu.core_type<tc>, window_params = [{transform_indices = @transform_0, window_bounds = array<i64: 8, 32>}, {pipeline_mode = #tpu.pipeline_mode<synchronous>, transform_indices = @transform_1, window_bounds = array<i64: 32, 32>}, {pipeline_mode = #tpu.pipeline_mode<synchronous>, transform_indices = @transform_2, window_bounds = array<i64: 1, 32>}, {pipeline_mode = #tpu.pipeline_mode<synchronous>, transform_indices = @transform_3, window_bounds = array<i64: 32, 1>}, {pipeline_mode = #tpu.pipeline_mode<synchronous>, transform_indices = @transform_4, window_bounds = array<i64: 1, 1>}, {transform_indices = @transform_5, window_bounds = array<i64: 8, 1>}]} {
    %c0_i32 = arith.constant 0 : i32
    %0 = arith.cmpi eq, %arg1, %c0_i32 : i32
    %1 = arith.extui %0 : i1 to i32
    %c0_i32_0 = arith.constant 0 : i32
    %2 = arith.cmpi ne, %1, %c0_i32_0 : i32
    scf.if %2 {
      %cst_10 = arith.constant 0.000000e+00 : f32
      %12 = vector.broadcast %cst_10 : f32 to vector<8x32xf32>
      %c0_11 = arith.constant 0 : index
      %c0_12 = arith.constant 0 : index
      %13 = vector.load %arg8[%c0_11, %c0_12] : memref<8x32xf32, #tpu.memory_space<vmem>>, vector<8x32xf32>
      tpu.vector_store %arg8[%c0_11, %c0_12], %12 {strides = array<i32>} : memref<8x32xf32, #tpu.memory_space<vmem>>, vector<8x32xf32>,
    } else {
    }
    %c0 = arith.constant 0 : index
    %c0_1 = arith.constant 0 : index
    %3 = vector.load %arg2[%c0, %c0_1] : memref<8x32xf32, #tpu.memory_space<vmem>>, vector<8x32xf32>
    %c0_2 = arith.constant 0 : index
    %c0_3 = arith.constant 0 : index
    %4 = vector.load %arg8[%c0_2, %c0_3] : memref<8x32xf32, #tpu.memory_space<vmem>>, vector<8x32xf32>
    %c0_4 = arith.constant 0 : index
    %c0_5 = arith.constant 0 : index
    %5 = vector.load %arg3[%c0_4, %c0_5] : memref<32x32xf32, #tpu.memory_space<vmem>>, vector<32x32xf32>
    %cst = arith.constant dense<0.000000e+00> : vector<8x32xf32>
    %6 = tpu.matmul %3, %5, %cst {dimension_numbers = #tpu.dot_dimension_numbers<[1], [0], [0], [1], [0, 0, 1, 1], [], []>} : vector<8x32xf32>, vector<32x32xf32>, vector<8x32xf32> -> vector<8x32xf32>
    %7 = arith.addf %4, %6 : vector<8x32xf32>
    %c0_6 = arith.constant 0 : index
    %c0_7 = arith.constant 0 : index
    %8 = vector.load %arg8[%c0_6, %c0_7] : memref<8x32xf32, #tpu.memory_space<vmem>>, vector<8x32xf32>
    tpu.vector_store %arg8[%c0_6, %c0_7], %7 {strides = array<i32>} : memref<8x32xf32, #tpu.memory_space<vmem>>, vector<8x32xf32>,
    %c0_i32_8 = arith.constant 0 : i32
    %9 = arith.cmpi eq, %arg1, %c0_i32_8 : i32
    %10 = arith.extui %9 : i1 to i32
    %c0_i32_9 = arith.constant 0 : i32
    %11 = arith.cmpi ne, %10, %c0_i32_9 : i32
    scf.if %11 {
      %c0_10 = arith.constant 0 : index
      %c0_11 = arith.constant 0 : index
      %12 = vector.load %arg8[%c0_10, %c0_11] : memref<8x32xf32, #tpu.memory_space<vmem>>, vector<8x32xf32>
      %c0_12 = arith.constant 0 : index
      %c0_13 = arith.constant 0 : index
      %13 = vector.load %arg4[%c0_12, %c0_13] : memref<1x32xf32, #tpu.memory_space<vmem>>, vector<1x32xf32>
      %14 = vector.broadcast %13 : vector<1x32xf32> to vector<8x32xf32>
      %15 = arith.addf %12, %14 : vector<8x32xf32>
      %cst_14 = arith.constant 0.000000e+00 : f32
      %16 = vector.broadcast %cst_14 : f32 to vector<8x32xf32>
      %17 = arith.maximumf %15, %16 : vector<8x32xf32>
      %c0_15 = arith.constant 0 : index
      %c0_16 = arith.constant 0 : index
      %18 = vector.load %arg5[%c0_15, %c0_16] : memref<32x1xf32, #tpu.memory_space<vmem>>, vector<32x1xf32>
      %cst_17 = arith.constant dense<0.000000e+00> : vector<8x1xf32>
      %19 = tpu.matmul %17, %18, %cst_17 {dimension_numbers = #tpu.dot_dimension_numbers<[1], [0], [0], [1], [0, 0, 1, 1], [], []>} : vector<8x32xf32>, vector<32x1xf32>, vector<8x1xf32> -> vector<8x1xf32>
      %c0_18 = arith.constant 0 : index
      %c0_19 = arith.constant 0 : index
      %20 = vector.load %arg6[%c0_18, %c0_19] : memref<1x1xf32, #tpu.memory_space<vmem>>, vector<1x1xf32>
      %21 = vector.broadcast %20 : vector<1x1xf32> to vector<8x1xf32>
      %22 = arith.addf %19, %21 : vector<8x1xf32>
      %c0_20 = arith.constant 0 : index
      %c0_21 = arith.constant 0 : index
      %23 = vector.load %arg7[%c0_20, %c0_21] : memref<8x1xf32, #tpu.memory_space<vmem>>, vector<8x1xf32>
      tpu.vector_store %arg7[%c0_20, %c0_21], %22 {strides = array<i32>} : memref<8x1xf32, #tpu.memory_space<vmem>>, vector<8x1xf32>,
    } else {
    }
    return
  }
  func.func @transform_0(%arg0: i32, %arg1: i32) -> (i32, i32) {
    %c0_i32 = arith.constant 0 : i32
    return %arg0, %arg1 : i32, i32
  }
  func.func @transform_1(%arg0: i32, %arg1: i32) -> (i32, i32) {
    %c0_i32 = arith.constant 0 : i32
    %c0_i32_0 = arith.constant 0 : i32
    %c0_i32_1 = arith.constant 0 : i32
    return %c0_i32, %c0_i32_0 : i32, i32
  }
  func.func @transform_2(%arg0: i32, %arg1: i32) -> (i32, i32) {
    %c0_i32 = arith.constant 0 : i32
    %c0_i32_0 = arith.constant 0 : i32
    %c0_i32_1 = arith.constant 0 : i32
    return %c0_i32, %c0_i32_0 : i32, i32
  }
  func.func @transform_3(%arg0: i32, %arg1: i32) -> (i32, i32) {
    %c0_i32 = arith.constant 0 : i32
    %c0_i32_0 = arith.constant 0 : i32
    %c0_i32_1 = arith.constant 0 : i32
    return %c0_i32, %c0_i32_0 : i32, i32
  }
  func.func @transform_4(%arg0: i32, %arg1: i32) -> (i32, i32) {
    %c0_i32 = arith.constant 0 : i32
    %c0_i32_0 = arith.constant 0 : i32
    %c0_i32_1 = arith.constant 0 : i32
    return %c0_i32, %c0_i32_0 : i32, i32
  }
  func.func @transform_5(%arg0: i32, %arg1: i32) -> (i32, i32) {
    %c0_i32 = arith.constant 0 : i32
    %c0_i32_0 = arith.constant 0 : i32
    return %arg0, %c0_i32 : i32, i32
  }
}

</mosaic_0001>

<bundles_post_ra>
// kernel: mlp_forward.1
= control target key start
LH: loop header
LB: loop body
LE: loop exit
PB: predicated region body
PF: predicated region fallthrough
CT: control target
= control target key end

     0   :  { %vm26_vm0 = vcmask 261120   ;;  %v264_v0 = vmov 0.0|0.0   ;;  %vm265_vm1 = vmmov 0   ;;  %v266_v4 = vmov 0.0   ;;  %s337_s1 = inlined_call_operand.vmem [shape: f32[32,32], index: 1, kind: input, shape index: {}]   ;;  %s338_s0 = inlined_call_operand.vmem [shape: f32[8,32], index: 0, kind: input, shape index: {}]   ;;  %s339_s3 = inlined_call_operand.vmem [shape: f32[32,1], index: 3, kind: input, shape index: {}]   ;;  %s340_s4 = inlined_call_operand.<no memory space> [shape: f32[1,1], index: 4, kind: input, shape index: {}]   ;;  %s341_s2 = inlined_call_operand.vmem [shape: f32[1,32], index: 2, kind: input, shape index: {}]   ;;  %s342_s5 = inlined_call_operand.vmem [shape: f32[8,1], index: 5, kind: output, shape index: {}]  }
   0x1   :  { %249 = vmatprep.subr.bf16.mxu0 %v264_v0  ;;  %v30_v1 = vld [vmem:[%s337_s1] sm:$0xff]  ;;  %v31_v2 = vld [vmem:[%s337_s1 + $0x8] sm:$0xff]  ;;  %v32_v3 = vld [vmem:[%s337_s1 + $0x10] sm:$0xff]  ;;  %235 = vmatprep.mubr.msk.f32.mxu0 %vm265_vm1, %v266_v4  ;;  %27 = vst.msk [vmem:[#allocation2] sm:$0xff] %vm26_vm0, %v266_v4  ;;  %v10_v15 = vstv %s340_s4  ;;  %vm207_vm2 = vcmask 7168  }
   0x2   :  { %v250_v5 = vpack.c.bf16 %v31_v2, %v30_v1  ;;  %v33_v6 = vld [vmem:[%s337_s1 + $0x18] sm:$0xff]  ;;  %255 = vmatprep.subr.bf16.mxu1 %v264_v0  ;;  %246 = vmatprep.mubr.msk.f32.mxu1 %vm265_vm1, %v266_v4  ;;  %v28_v8 = vld [vmem:[%s338_s0] sm:$0xff]  ;;  %v124_v10 = vld [vmem:[%s339_s3 + $0x8] sm:$0xff]  ;;  %11 = vst [vmem:[#allocation3] sm:$0x1] %v10_v15 }
   0x3   :  { %v253_v7 = vpack.c.bf16 %v33_v6, %v32_v3  ;;  %v123_v9 = vld [vmem:[%s339_s3] sm:$0xff]  ;;  %v125_v11 = vld [vmem:[%s339_s3 + $0x10] sm:$0xff]  ;;  %v126_v13 = vld [vmem:[%s339_s3 + $0x18] sm:$0xff] }
   0x4   :  { %251 = vmatpush3.bf16.msra.mxu0 %v250_v5  ;;  %v256_v12 = vpack.c.bf16 %v124_v10, %v123_v9  ;;  %v259_v14 = vpack.c.bf16 %v126_v13, %v125_v11  ;;  %v214_v20 = vld [vmem:[%s341_s2] ss:$0 sm:$0xff] }
   0x5   :  { %252 = vmatprep.subr.bf16.mxu0 %v264_v0 }
   0x6   :  { %257 = vmatpush3.bf16.msra.mxu1 %v256_v12 }
   0x7   :  { %258 = vmatprep.subr.bf16.mxu1 %v264_v0 }
   0x8   :  { %254 = vmatpush3.bf16.msra.mxu0 %v253_v7  ;;  %v29_v16 = vld [vmem:[#allocation2] sm:$0xff] }
   0x9   :  { %v215_v24 = vld [vmem:[#allocation3] ss:$0 sm:$0xff] }
   0xa   :  { %260 = vmatpush3.bf16.msra.mxu1 %v259_v14 }
   0xb   :  { %236 = vmatmul.mubr.msk.f32.vlgmr.msra.gmra.mrb[0].mxu0 %vm26_vm0, %v28_v8 }
  0xde   :  { %v104_v17 = vpop.f32.mrb[0].mxu0 }
  0xdf   :  { %v108_v18 = vadd.f32 %v104_v17, %v29_v16  ;;  %v237_v19 = vpop.f32.mrb[1].mxu0 }
  0xe1   :  { %109 = vst.msk [vmem:[#allocation2] sm:$0xff] %vm26_vm0, %v108_v18 }
  0xe8   :  { %v113_v21 = vld [vmem:[#allocation2] sm:$0xff] }
  0xe9   :  { %v121_v22 = vadd.f32 %v214_v20, %v113_v21 }
  0xeb   :  { %v122_v23 = vmax.f32 %v121_v22, 0.0 }
  0xed   :  { %247 = vmatmul.mubr.msk.f32.vlgmr.msra.gmra.mrb[0].mxu1 %vm26_vm0, %v122_v23 }
 0x1c0   :  { %v203_v25 = vpop.f32.mrb[0].mxu1 }
 0x1c1   :  { %v204_v26 = vadd.f32 %v215_v24, %v203_v25  ;;  %v248_v27 = vpop.f32.mrb[1].mxu1 }
 0x1c3   :  { %208 = vst.msk [vmem:[%s342_s5] sm:$0xff] %vm207_vm2, %v204_v26 }

</bundles_post_ra>
